<compile_context>
chip_gen: v6e
topology: v6e:2x2x1
jax: 0.10.0
libtpu: 0.0.40
codegen_flags: <defaults>
</compile_context>

<pallas_src>
import jax
import jax.numpy as jnp
from jax.experimental import pallas as pl
from jax.experimental.pallas import tpu as pltpu

# ---------------------------------------------------------------------------
# Module hyper-parameters (match the PyTorch __init__ defaults).
# ---------------------------------------------------------------------------
D = 3                      # number of hidden layers in the time net
W = 256                    # hidden width
INPUT_CH = 4 + 3           # 7
N_FREQS = 10               # get_embedder(10, 1, 0)
INPUT_CH_TIME = 1 * (1 + 2 * N_FREQS)   # 21 (include_input + sin/cos * 10 freqs)
OUT_CH = 4
OUT_PAD = 8                # small padded output width (full-array last dim block)
SKIPS = (4,)               # never triggered with D=3 (loop index i in {0,1})


# ---------------------------------------------------------------------------
# Chip-aware configuration (tile cap, min grid steps, VMEM limit, epilogue).
# ---------------------------------------------------------------------------
def _device_kind():
    try:
        return jax.devices()[0].device_kind.lower()
    except Exception:
        return ""


def _chip_config():
    kind = _device_kind()
    if "v5" in kind:
        # v5e/v5p: 128 MiB VMEM, no bf16 VPU -> big tiles, f32 epilogue.
        return dict(tile_cap=8192, min_steps=1,
                    vmem_bytes=96 * 1024 * 1024, bf16_epilogue=False)
    if "v6" in kind:
        # v6e: single TC, 128 MiB VMEM, bf16 VPU.
        return dict(tile_cap=8192, min_steps=1,
                    vmem_bytes=96 * 1024 * 1024, bf16_epilogue=True)
    if "v7" in kind:
        # v7x: 2 TCs, only 64 MiB VMEM per TC -> keep >= 2 parallel grid steps,
        # moderate tiles, leave VMEM headroom.
        # TODO(synk): optional fp8 operands for the two 256x256 matmuls on v7x,
        # gated by an accuracy check against forward_ref.
        return dict(tile_cap=4096, min_steps=2,
                    vmem_bytes=48 * 1024 * 1024, bf16_epilogue=True)
    # Unknown generation: conservative, correct everywhere.
    return dict(tile_cap=2048, min_steps=1,
                vmem_bytes=48 * 1024 * 1024, bf16_epilogue=False)


# ---------------------------------------------------------------------------
# Positional time embedding (Embedder with include_input, log_sampling).
# Only evaluated on a single row in the hot path (time is shared by all pts).
# ---------------------------------------------------------------------------
def embed_time(ts):
    # ts: (N, 1) float32  ->  (N, 21)
    freq_bands = 2.0 ** jnp.linspace(0.0, float(N_FREQS - 1), N_FREQS)
    parts = [ts]
    for f in freq_bands:
        parts.append(jnp.sin(ts * f))
        parts.append(jnp.cos(ts * f))
    return jnp.concatenate(parts, axis=-1)


# ---------------------------------------------------------------------------
# Pallas kernel factory: whole query_time MLP for one tile of points.
#   h  = relu(x @ W0x + b0')     (time embedding already folded into b0')
#   h  = relu(h @ W1 + b1)
#   h  = relu(h @ W2 + b2)
#   dx = h @ Wf_pad + bf_pad     (8-wide padded output)
# Matmul operands bf16, accumulation f32; bias/ReLU epilogue in bf16 on chips
# with a bf16 VPU, else f32.  (skips=[4] never hit for D=3 -> no skip concat.)
# ---------------------------------------------------------------------------
def make_time_mlp_kernel(bf16_epilogue):
    def kernel(x_ref, w0_ref, b0_ref, w1_ref, b1_ref,
               w2_ref, b2_ref, wf_ref, bf_ref, out_ref):
        def layer(h_in, w_ref, b_ref):
            acc = jnp.dot(h_in, w_ref[...], preferred_element_type=jnp.float32)
            if bf16_epilogue:
                acc = acc.astype(jnp.bfloat16)          # one cast of the accum
            h = jnp.maximum(acc + b_ref[...], 0.0)      # bias dtype == epi dtype
            return h.astype(jnp.bfloat16)               # no-op in bf16 path

        h = layer(x_ref[...], w0_ref, b0_ref)
        h = layer(h, w1_ref, b1_ref)
        h = layer(h, w2_ref, b2_ref)
        out = jnp.dot(h, wf_ref[...], preferred_element_type=jnp.float32)
        out_ref[...] = out + bf_ref[...]                # f32 output
    return kernel


def _choose_tile(n_pad, tile_cap, min_steps):
    candidates = [t for t in (8192, 4096, 2048, 1024, 512, 256, 128)
                  if t <= tile_cap]
    # Prefer the largest tile that divides n_pad and leaves >= min_steps grid
    # steps (so v7x's two TensorCores both get work on the "parallel" axis).
    for t in candidates:
        if n_pad % t == 0 and n_pad // t >= min_steps:
            return t
    for t in candidates:
        if n_pad % t == 0:
            return t
    return 128


def time_mlp_pallas(x, kparams, cfg):
    n = x.shape[0]
    n_pad = ((n + 127) // 128) * 128
    if n_pad != n:
        # TODO(synk): could switch to grid=pl.cdiv(n, tile_n) with a ragged last
        # block instead of padding; kept explicit pad+slice for verified masking.
        x = jnp.pad(x, ((0, n_pad - n), (0, 0)))
    tile_n = _choose_tile(n_pad, cfg["tile_cap"], cfg["min_steps"])

    w0, b0, w1, b1, w2, b2, wf, bf = kparams
    x_bf = x.astype(jnp.bfloat16)

    full = lambda shape: pl.BlockSpec(shape, lambda i: (0, 0))

    out = pl.pallas_call(
        make_time_mlp_kernel(cfg["bf16_epilogue"]),
        out_shape=jax.ShapeDtypeStruct((n_pad, OUT_PAD), jnp.float32),
        grid_spec=pltpu.PrefetchScalarGridSpec(
            num_scalar_prefetch=0,
            grid=(n_pad // tile_n,),
            in_specs=[
                pl.BlockSpec((tile_n, INPUT_CH), lambda i: (i, 0)),  # x tile
                full((INPUT_CH, W)), full((1, W)),                   # W0x, b0'
                full((W, W)),        full((1, W)),                   # W1, b1
                full((W, W)),        full((1, W)),                   # W2, b2
                full((W, OUT_PAD)),  full((1, OUT_PAD)),             # Wf_pad, bf_pad
            ],
            out_specs=pl.BlockSpec((tile_n, OUT_PAD), lambda i: (i, 0)),
        ),
        compiler_params=pltpu.CompilerParams(
            dimension_semantics=("parallel",),
            vmem_limit_bytes=cfg["vmem_bytes"]),
    )(x_bf, w0, b0, w1, b1, w2, b2, wf, bf)

    return out[:n, :OUT_CH]


# ---------------------------------------------------------------------------
# Wrapper-side parameter prep: fold shared time embedding into layer-0 bias,
# cast matmul weights to bf16, pad the final layer to an 8-wide output, and
# cast hidden-layer biases to the epilogue dtype.
# ---------------------------------------------------------------------------
def prepare_kernel_params(params, ts_emb_row, bf16_epilogue):
    w0, b0, w1, b1, w2, b2, wf, bf = params
    # [x, ts_emb] @ W0 + b0 == x @ W0[:7] + (ts_emb @ W0[7:] + b0)
    b0_eff = b0 + ts_emb_row @ w0[INPUT_CH:, :]                       # (1, W) f32
    wf_pad = jnp.zeros((W, OUT_PAD), jnp.float32).at[:, :OUT_CH].set(wf)
    bf_pad = jnp.zeros((1, OUT_PAD), jnp.float32).at[:, :OUT_CH].set(bf)
    epi = jnp.bfloat16 if bf16_epilogue else jnp.float32
    bf16 = jnp.bfloat16
    return (w0[:INPUT_CH, :].astype(bf16), b0_eff.astype(epi),
            w1.astype(bf16), b1.astype(epi),
            w2.astype(bf16), b2.astype(epi),
            wf_pad.astype(bf16), bf_pad)                              # bf_pad stays f32


# ---------------------------------------------------------------------------
# Deterministic parameter init (PyTorch nn.Linear-style U(-1/sqrt(fan_in), ·)).
# ---------------------------------------------------------------------------
def init_params(key):
    def linear(key, fan_in, fan_out):
        kw, kb = jax.random.split(key)
        bound = 1.0 / jnp.sqrt(float(fan_in))
        w = jax.random.uniform(kw, (fan_in, fan_out), jnp.float32, -bound, bound)
        b = jax.random.uniform(kb, (1, fan_out), jnp.float32, -bound, bound)
        return w, b

    k0, k1, k2, kf = jax.random.split(key, 4)
    w0, b0 = linear(k0, INPUT_CH + INPUT_CH_TIME, W)   # Linear(7 + 21, 256)
    w1, b1 = linear(k1, W, W)                          # Linear(256, 256)
    w2, b2 = linear(k2, W, W)                          # Linear(256, 256)
    wf, bf = linear(kf, W, OUT_CH)                     # net_final: Linear(256, 4)
    return (w0, b0, w1, b1, w2, b2, wf, bf)


def _check_uniform_time(ts):
    # Contract (mirrors the PyTorch assert): every row of ts holds the same
    # time value; the time embedding is folded into the layer-0 bias.  Checked
    # eagerly; under jit the caller is responsible for upholding the contract.
    try:
        is_tracer = isinstance(ts, jax.core.Tracer)
    except AttributeError:
        is_tracer = False
    if not is_tracer:
        assert int(jnp.unique(jnp.asarray(ts)[:, :1]).shape[0]) == 1, \
            "Only accepts all points from same time"


# ---------------------------------------------------------------------------
# Full forward (mirrors DirectTemporalNeRF_rot.forward).
# ---------------------------------------------------------------------------
def forward(params, x, ts, iteration):
    # x: (N, 7), ts: (N, 1) all equal time, iteration: concrete python int.
    # TODO(synk): if `iteration` ever becomes a traced value under jit, switch to lax.cond.
    _check_uniform_time(ts)
    if iteration < 3000:
        return jnp.zeros((x.shape[0], OUT_CH), jnp.float32)
    cfg = _chip_config()
    # All points share the same time value, so the 21-dim positional time
    # embedding collapses into the layer-0 bias.
    ts_emb_row = embed_time(ts[:1])                      # (1, 21)
    kparams = prepare_kernel_params(params, ts_emb_row, cfg["bf16_epilogue"])
    return time_mlp_pallas(x, kparams, cfg)


# Pure-JAX f32 reference for correctness checking (mirrors query_time).
def forward_ref(params, x, ts, iteration):
    if iteration < 3000:
        return jnp.zeros((x.shape[0], OUT_CH), jnp.float32)
    w0, b0, w1, b1, w2, b2, wf, bf = params
    h = jnp.concatenate([x, embed_time(ts)], axis=-1)
    h = jnp.maximum(h @ w0 + b0, 0.0)
    h = jnp.maximum(h @ w1 + b1, 0.0)
    h = jnp.maximum(h @ w2 + b2, 0.0)
    return h @ wf + bf


if __name__ == "__main__":
    key = jax.random.PRNGKey(0)
    kp, kx = jax.random.split(key)

    N = 300  # exercises zero-padding (-> 384 rows) and a multi-step grid
    params = init_params(kp)
    x = jax.random.normal(kx, (N, INPUT_CH), jnp.float32)
    ts = jnp.full((N, 1), 0.5, jnp.float32)  # "all points from same time"

    # iteration >= 3000 -> exercise the Pallas MLP path.
    dx = jax.block_until_ready(forward(params, x, ts, iteration=5000))
    dx_ref = forward_ref(params, x, ts, iteration=5000)
    assert dx.shape == (N, OUT_CH)
    # bf16 matmul operands (and bf16 epilogue on v6e/v7x) -> looser tolerance
    # vs. the pure-f32 reference.
    assert jnp.allclose(dx, dx_ref, atol=5e-2, rtol=5e-2), \
        float(jnp.max(jnp.abs(dx - dx_ref)))

    # iteration < 3000 -> zeros branch (plain JAX, matches PyTorch semantics).
    dx0 = jax.block_until_ready(forward(params, x, ts, iteration=100))
    assert jnp.all(dx0 == 0.0)

    print("KERNEL_OK")
</pallas_src>

<mosaic_0001>
module attributes {stable_mosaic.version = 11 : i64} {
  func.func @kernel(%arg0: i32, %arg1: memref<128x7xbf16, #tpu.memory_space<vmem>>, %arg2: memref<7x256xbf16, #tpu.memory_space<vmem>>, %arg3: memref<1x256xf32, #tpu.memory_space<vmem>>, %arg4: memref<256x256xbf16, #tpu.memory_space<vmem>>, %arg5: memref<1x256xf32, #tpu.memory_space<vmem>>, %arg6: memref<256x256xbf16, #tpu.memory_space<vmem>>, %arg7: memref<1x256xf32, #tpu.memory_space<vmem>>, %arg8: memref<256x8xbf16, #tpu.memory_space<vmem>>, %arg9: memref<1x8xf32, #tpu.memory_space<vmem>>, %arg10: memref<128x8xf32, #tpu.memory_space<vmem>>) attributes {dimension_semantics = [#tpu.dimension_semantics<parallel>], iteration_bounds = array<i64: 3>, scalar_prefetch = 0 : i64, scratch_operands = 0 : i64, tpu.core_type = #tpu.core_type<tc>, window_params = [{transform_indices = @transform_0, window_bounds = array<i64: 128, 7>}, {pipeline_mode = #tpu.pipeline_mode<synchronous>, transform_indices = @transform_1, window_bounds = array<i64: 7, 256>}, {pipeline_mode = #tpu.pipeline_mode<synchronous>, transform_indices = @transform_2, window_bounds = array<i64: 1, 256>}, {pipeline_mode = #tpu.pipeline_mode<synchronous>, transform_indices = @transform_3, window_bounds = array<i64: 256, 256>}, {pipeline_mode = #tpu.pipeline_mode<synchronous>, transform_indices = @transform_4, window_bounds = array<i64: 1, 256>}, {pipeline_mode = #tpu.pipeline_mode<synchronous>, transform_indices = @transform_5, window_bounds = array<i64: 256, 256>}, {pipeline_mode = #tpu.pipeline_mode<synchronous>, transform_indices = @transform_6, window_bounds = array<i64: 1, 256>}, {pipeline_mode = #tpu.pipeline_mode<synchronous>, transform_indices = @transform_7, window_bounds = array<i64: 256, 8>}, {pipeline_mode = #tpu.pipeline_mode<synchronous>, transform_indices = @transform_8, window_bounds = array<i64: 1, 8>}, {transform_indices = @transform_9, window_bounds = array<i64: 128, 8>}]} {
    %c0 = arith.constant 0 : index
    %c0_0 = arith.constant 0 : index
    %0 = vector.load %arg1[%c0, %c0_0] : memref<128x7xbf16, #tpu.memory_space<vmem>>, vector<128x7xbf16>
    %c0_1 = arith.constant 0 : index
    %c0_2 = arith.constant 0 : index
    %1 = vector.load %arg2[%c0_1, %c0_2] : memref<7x256xbf16, #tpu.memory_space<vmem>>, vector<7x256xbf16>
    %cst = arith.constant dense<0.000000e+00> : vector<128x256xf32>
    %2 = tpu.matmul %0, %1, %cst {dimension_numbers = #tpu.dot_dimension_numbers<[1], [0], [0], [1], [0, 0, 1, 1], [], []>} : vector<128x7xbf16>, vector<7x256xbf16>, vector<128x256xf32> -> vector<128x256xf32>
    %c0_3 = arith.constant 0 : index
    %c0_4 = arith.constant 0 : index
    %3 = vector.load %arg3[%c0_3, %c0_4] : memref<1x256xf32, #tpu.memory_space<vmem>>, vector<1x256xf32>
    %4 = vector.broadcast %3 : vector<1x256xf32> to vector<128x256xf32>
    %5 = arith.addf %2, %4 : vector<128x256xf32>
    %cst_5 = arith.constant 0.000000e+00 : f32
    %6 = vector.broadcast %cst_5 : f32 to vector<128x256xf32>
    %7 = arith.maximumf %5, %6 : vector<128x256xf32>
    %8 = arith.truncf %7 : vector<128x256xf32> to vector<128x256xbf16>
    %c0_6 = arith.constant 0 : index
    %c0_7 = arith.constant 0 : index
    %9 = vector.load %arg4[%c0_6, %c0_7] : memref<256x256xbf16, #tpu.memory_space<vmem>>, vector<256x256xbf16>
    %cst_8 = arith.constant dense<0.000000e+00> : vector<128x256xf32>
    %10 = tpu.matmul %8, %9, %cst_8 {dimension_numbers = #tpu.dot_dimension_numbers<[1], [0], [0], [1], [0, 0, 1, 1], [], []>} : vector<128x256xbf16>, vector<256x256xbf16>, vector<128x256xf32> -> vector<128x256xf32>
    %c0_9 = arith.constant 0 : index
    %c0_10 = arith.constant 0 : index
    %11 = vector.load %arg5[%c0_9, %c0_10] : memref<1x256xf32, #tpu.memory_space<vmem>>, vector<1x256xf32>
    %12 = vector.broadcast %11 : vector<1x256xf32> to vector<128x256xf32>
    %13 = arith.addf %10, %12 : vector<128x256xf32>
    %cst_11 = arith.constant 0.000000e+00 : f32
    %14 = vector.broadcast %cst_11 : f32 to vector<128x256xf32>
    %15 = arith.maximumf %13, %14 : vector<128x256xf32>
    %16 = arith.truncf %15 : vector<128x256xf32> to vector<128x256xbf16>
    %c0_12 = arith.constant 0 : index
    %c0_13 = arith.constant 0 : index
    %17 = vector.load %arg6[%c0_12, %c0_13] : memref<256x256xbf16, #tpu.memory_space<vmem>>, vector<256x256xbf16>
    %cst_14 = arith.constant dense<0.000000e+00> : vector<128x256xf32>
    %18 = tpu.matmul %16, %17, %cst_14 {dimension_numbers = #tpu.dot_dimension_numbers<[1], [0], [0], [1], [0, 0, 1, 1], [], []>} : vector<128x256xbf16>, vector<256x256xbf16>, vector<128x256xf32> -> vector<128x256xf32>
    %c0_15 = arith.constant 0 : index
    %c0_16 = arith.constant 0 : index
    %19 = vector.load %arg7[%c0_15, %c0_16] : memref<1x256xf32, #tpu.memory_space<vmem>>, vector<1x256xf32>
    %20 = vector.broadcast %19 : vector<1x256xf32> to vector<128x256xf32>
    %21 = arith.addf %18, %20 : vector<128x256xf32>
    %cst_17 = arith.constant 0.000000e+00 : f32
    %22 = vector.broadcast %cst_17 : f32 to vector<128x256xf32>
    %23 = arith.maximumf %21, %22 : vector<128x256xf32>
    %24 = arith.truncf %23 : vector<128x256xf32> to vector<128x256xbf16>
    %c0_18 = arith.constant 0 : index
    %c0_19 = arith.constant 0 : index
    %25 = vector.load %arg8[%c0_18, %c0_19] : memref<256x8xbf16, #tpu.memory_space<vmem>>, vector<256x8xbf16>
    %cst_20 = arith.constant dense<0.000000e+00> : vector<128x8xf32>
    %26 = tpu.matmul %24, %25, %cst_20 {dimension_numbers = #tpu.dot_dimension_numbers<[1], [0], [0], [1], [0, 0, 1, 1], [], []>} : vector<128x256xbf16>, vector<256x8xbf16>, vector<128x8xf32> -> vector<128x8xf32>
    %c0_21 = arith.constant 0 : index
    %c0_22 = arith.constant 0 : index
    %27 = vector.load %arg9[%c0_21, %c0_22] : memref<1x8xf32, #tpu.memory_space<vmem>>, vector<1x8xf32>
    %28 = vector.broadcast %27 : vector<1x8xf32> to vector<128x8xf32>
    %29 = arith.addf %26, %28 : vector<128x8xf32>
    %c0_23 = arith.constant 0 : index
    %c0_24 = arith.constant 0 : index
    %30 = vector.load %arg10[%c0_23, %c0_24] : memref<128x8xf32, #tpu.memory_space<vmem>>, vector<128x8xf32>
    tpu.vector_store %arg10[%c0_23, %c0_24], %29 {strides = array<i32>} : memref<128x8xf32, #tpu.memory_space<vmem>>, vector<128x8xf32>,
    return
  }
  func.func @transform_0(%arg0: i32) -> (i32, i32) {
    %c0_i32 = arith.constant 0 : i32
    %c0_i32_0 = arith.constant 0 : i32
    return %arg0, %c0_i32 : i32, i32
  }
  func.func @transform_1(%arg0: i32) -> (i32, i32) {
    %c0_i32 = arith.constant 0 : i32
    %c0_i32_0 = arith.constant 0 : i32
    %c0_i32_1 = arith.constant 0 : i32
    return %c0_i32, %c0_i32_0 : i32, i32
  }
  func.func @transform_2(%arg0: i32) -> (i32, i32) {
    %c0_i32 = arith.constant 0 : i32
    %c0_i32_0 = arith.constant 0 : i32
    %c0_i32_1 = arith.constant 0 : i32
    return %c0_i32, %c0_i32_0 : i32, i32
  }
  func.func @transform_3(%arg0: i32) -> (i32, i32) {
    %c0_i32 = arith.constant 0 : i32
    %c0_i32_0 = arith.constant 0 : i32
    %c0_i32_1 = arith.constant 0 : i32
    return %c0_i32, %c0_i32_0 : i32, i32
  }
  func.func @transform_4(%arg0: i32) -> (i32, i32) {
    %c0_i32 = arith.constant 0 : i32
    %c0_i32_0 = arith.constant 0 : i32
    %c0_i32_1 = arith.constant 0 : i32
    return %c0_i32, %c0_i32_0 : i32, i32
  }
  func.func @transform_5(%arg0: i32) -> (i32, i32) {
    %c0_i32 = arith.constant 0 : i32
    %c0_i32_0 = arith.constant 0 : i32
    %c0_i32_1 = arith.constant 0 : i32
    return %c0_i32, %c0_i32_0 : i32, i32
  }
  func.func @transform_6(%arg0: i32) -> (i32, i32) {
    %c0_i32 = arith.constant 0 : i32
    %c0_i32_0 = arith.constant 0 : i32
    %c0_i32_1 = arith.constant 0 : i32
    return %c0_i32, %c0_i32_0 : i32, i32
  }
  func.func @transform_7(%arg0: i32) -> (i32, i32) {
    %c0_i32 = arith.constant 0 : i32
    %c0_i32_0 = arith.constant 0 : i32
    %c0_i32_1 = arith.constant 0 : i32
    return %c0_i32, %c0_i32_0 : i32, i32
  }
  func.func @transform_8(%arg0: i32) -> (i32, i32) {
    %c0_i32 = arith.constant 0 : i32
    %c0_i32_0 = arith.constant 0 : i32
    %c0_i32_1 = arith.constant 0 : i32
    return %c0_i32, %c0_i32_0 : i32, i32
  }
  func.func @transform_9(%arg0: i32) -> (i32, i32) {
    %c0_i32 = arith.constant 0 : i32
    %c0_i32_0 = arith.constant 0 : i32
    return %arg0, %c0_i32 : i32, i32
  }
}

</mosaic_0001>

<bundles_post_ra>
// kernel: tpu_custom_call.1
= control target key start
LH: loop header
LB: loop body
LE: loop exit
PB: predicated region body
PF: predicated region fallthrough
CT: control target
= control target key end

     0   :  { %14 = vsyncpa [#allocation3], 0  ;;  %s2099_s30 = smov 0   ;;  %s2504_s0 = inlined_call_operand.vmem [shape: bf16[384,7], index: 0, kind: input, shape index: {}]   ;;  %s2505_s1 = inlined_call_operand.vmem [shape: bf16[7,256], index: 1, kind: input, shape index: {}]   ;;  %s2506_s2 = inlined_call_operand.vmem [shape: f32[1,256], index: 2, kind: input, shape index: {}]   ;;  %s2507_s3 = inlined_call_operand.vmem [shape: bf16[256,256], index: 3, kind: input, shape index: {}]   ;;  %s2508_s4 = inlined_call_operand.vmem [shape: f32[1,256], index: 4, kind: input, shape index: {}]   ;;  %s2509_s5 = inlined_call_operand.hbm [shape: bf16[256,256], index: 5, kind: input, shape index: {}]   ;;  %s2510_s6 = inlined_call_operand.vmem [shape: f32[1,256], index: 6, kind: input, shape index: {}]   ;;  %s2511_s7 = inlined_call_operand.vmem [shape: bf16[256,8], index: 7, kind: input, shape index: {}]   ;;  %s2512_s8 = inlined_call_operand.vmem [shape: f32[1,8], index: 8, kind: input, shape index: {}]   ;;  %s2513_s9 = inlined_call_operand.vmem [shape: f32[384,8], index: 9, kind: output, shape index: {}]  }
   0x1 LB: > { %s1669_s10 = sadd.s32 4294967295, %s2042_s30   ;;  %p1671_p0 = scmp.ge.s32.totalorder %s2042_s30, 1  ;;  %s2042_s30 = sphi %s2099_s30, %s20_s30  }
   0x2   : > { %p245_p1 = scmp.lt.s32.totalorder %s2042_s30, 4  ;;  %s2044_s11 = smov [#allocation2]  }
   0x3   : > { %s269_s12 = sshll.u32 %s2044_s11, 4  ;;  %p2111_p3 = scmp.eq.s32.totalorder %s1669_s10, 0  ;;  %s270_s12 = int_to_ptr.vmem [resolvable:$true] %s269_s12 }
   0x4   : > { %p2107_p2 = pnand %p1671_p0, %p245_p1  ;;  %s2017_s15 = scalar_lea.vmem %s270_s12, 4096 }
   0x5   : > { %p2018_p7 = scmp.ne.s32.totalorder %s270_s12, %s2017_s15  ;;  %p2025_p10 = scmp.lt.s32.totalorder %s270_s12, %s270_s12 }
   0x6   : > { %p1865_p4 = pneg %p2107_p2  ;;  %p2026_p11 = scmp.lt.s32.totalorder %s2017_s15, %s2017_s15 }
   0x8   : > { %p1866_p5 = pnand %p2111_p3, %p1865_p4  ;;  %p2027_p12 = por %p2026_p11, %p2025_p10 }
   0xa   : > { %p2008_p6 = pneg %p1866_p5 }
   0xc   : > { %p2020_p8 = pnand %p2018_p7, %p2008_p6 }
   0xe   : > { %p2021_p9 = pneg %p2020_p8 }
  0x10   : > { %p2028_p13 = pnand %p2027_p12, %p2021_p9 }
  0x12   : > { %2031 = shalt.err (!%p2028_p13)
}
  0x13   : > { %s2045_s16 = smov 128   ;;  %s2046_s17 = smov 8  }
  0x14   : > { %1868 = dma.hbm_to_vmem [thread:$0]  (!%p1866_p5), %s2509_s5, 4096, %s270_s12, [#allocation3], %s2045_s16, %s2045_s16, %s2046_s17  }
  0x15   : > { %303 = sbr.rel (%p2107_p2) target bundleno = 915 (0x393), region = 56 }
  0x1a   : > { %2037 = dma.done.wait (%p2111_p3), [#allocation3], 4096  }
  0x1b   : > { %2039 = vsyncadd (%p2111_p3), [#allocation3], 4294963200  ;;  %vm451_vm0 = vcmask 1042432   ;;  %v2047_v0 = vmov 0   ;;  %s1676_s20 = sshll.u32 %s1669_s10, 4  ;;  %vm452_vm1 = vcmask 1043456  }
  0x1c   : > { %493 = vmatprep.mubr.bf16.mxu0 %v2047_v0  ;;  %p340_p0 = scmp.lt.s32.totalorder %s1676_s20, 47  ;;  %v2048_v1 = vmov 65535   ;;  %v368_v3 = vld [vmem:[%s2505_s1] sm:$0xff]  ;;  %vm426_vm2 = vcmask 56320   ;;  %v1894_v10 = vld [vmem:[%s2507_s3 + $0x74] ss:$8 sps:$4 sm:$0xff]  }
  0x1d   : > { %v453_v2 = vsel %vm451_vm0, 4294967295, %v2048_v1  ;;  %v1689_v5 = vcombine.high %v368_v3, %v368_v3  ;;  %v1688_v6 = vcombine.low %v368_v3, %v368_v3  ;;  %v1896_v11 = vld [vmem:[%s2507_s3 + $0x70] ss:$8 sps:$4 sm:$0xff]   ;;  %v1897_v12 = vld [vmem:[%s2507_s3 + $0x64] ss:$8 sps:$4 sm:$0xff]   ;;  %826 = vmatprep.subr.bf16.mxu1 %v1894_v10  ;;  %vm1584_vm3 = vcmask 64512  }
  0x1e   : > { %s2517_s20 = smov (!%p340_p0, %s1676_s20), 47  ;;  %v454_v4 = vsel %vm452_vm1, %v453_v2, 0  ;;  %827 = vmatpush1.bf16.msra.mxu1 %v1896_v11  ;;  %v1899_v13 = vld [vmem:[%s2507_s3 + $0x60] ss:$8 sps:$4 sm:$0xff]   ;;  %v1900_v15 = vld [vmem:[%s2507_s3 + $0x54] ss:$8 sps:$4 sm:$0xff]   ;;  %v371_v11 = vlaneseq }
  0x1f   : > { %s1677_s21 = sshll.u32 %s2517_s20, 2  ;;  %v459_v7 = vand.u32 %v1689_v5, %v454_v4  ;;  %v456_v8 = vand.u32 %v1688_v6, %v454_v4  ;;  %828 = vmatprep.subr.bf16.mxu1 %v1897_v12  ;;  %v1902_v16 = vld [vmem:[%s2507_s3 + $0x50] ss:$8 sps:$4 sm:$0xff]   ;;  %v1903_v17 = vld [vmem:[%s2507_s3 + $0x44] ss:$8 sps:$4 sm:$0xff]   ;;  %s1679_s16 = sshll.u32 %s2517_s20, 3 }
  0x20   : > { %s2138_s26 = scalar_lea.vmem %s2504_s0, %s1677_s21  ;;  %v1905_v18 = vld [vmem:[%s2507_s3 + $0x40] ss:$8 sps:$4 sm:$0xff]   ;;  %v1906_v20 = vld [vmem:[%s2507_s3 + $0x34] ss:$8 sps:$4 sm:$0xff]   ;;  %v1908_v21 = vld [vmem:[%s2507_s3 + $0x30] ss:$8 sps:$4 sm:$0xff]   ;;  %s2451_s22 = scalar_lea.vmem %s2513_s9, %s1679_s16 }
  0x21   : > { %475 = vmatprep.subr.bf16.mxu0 %v459_v7  ;;  %v1886_v9 = vld [vmem:[%s2138_s26] sm:$0xff]   ;;  %v1887_v14 = vld [vmem:[%s2138_s26 + $0x8] sm:$0xff]   ;;  %v1888_v19 = vld [vmem:[%s2138_s26 + $0x10] sm:$0xff]   ;;  %v372_v12 = vshrl.u32 %v371_v11, 7 }
  0x22   : > { %476 = vmatpush1.bf16.msra.mxu0 %v456_v8  ;;  %829 = vmatpush1.bf16.msra.mxu1 %v1899_v13  ;;  %v1909_v22 = vld [vmem:[%s2507_s3 + $0x24] ss:$8 sps:$4 sm:$0xff]   ;;  %v1911_v23 = vld [vmem:[%s2507_s3 + $0x20] ss:$8 sps:$4 sm:$0xff]   ;;  %v1889_v24 = vld [vmem:[%s2138_s26 + $0x18] sm:$0xff]  }
  0x23   : > { %830 = vmatprep.subr.bf16.mxu1 %v1900_v15  ;;  %v1912_v25 = vld [vmem:[%s2507_s3 + $0x14] ss:$8 sps:$4 sm:$0xff]   ;;  %v1914_v26 = vld [vmem:[%s2507_s3 + $0x10] ss:$8 sps:$4 sm:$0xff]   ;;  %v1915_v27 = vld [vmem:[%s2507_s3 + $0x4] ss:$8 sps:$4 sm:$0xff]  }
  0x24   : > { %v1917_v28 = vld [vmem:[%s2507_s3] ss:$8 sps:$4 sm:$0xff]   ;;  %v1918_v30 = vld [vmem:[%s2507_s3 + $0xf4] ss:$8 sps:$4 sm:$0xff]   ;;  %v1920_v31 = vld [vmem:[%s2507_s3 + $0xf0] ss:$8 sps:$4 sm:$0xff]  }
  0x25   : > { %1690 = vmatmul.mubr.msk.bf16.vlgmr.msra.gmra.mxu0 %vm426_vm2, %v1886_v9  ;;  %v1890_v29 = vld [vmem:[%s2138_s26 + $0x20] sm:$0xff]   ;;  %v1891_v34 = vld [vmem:[%s2138_s26 + $0x28] sm:$0xff]   ;;  %v1924_v35 = vld [vmem:[%s2507_s3 + $0xd4] ss:$8 sps:$4 sm:$0xff]   ;;  %v2259_v13 = vsub.s32 1, %v372_v12 }
  0x26   : > { %503 = vmatprep.mubr.bf16.mxu0 %v2047_v0  ;;  %831 = vmatpush1.bf16.msra.mxu1 %v1902_v16  ;;  %v1921_v32 = vld [vmem:[%s2507_s3 + $0xe4] ss:$8 sps:$4 sm:$0xff]   ;;  %v1923_v33 = vld [vmem:[%s2507_s3 + $0xe0] ss:$8 sps:$4 sm:$0xff]   ;;  %v1926_v36 = vld [vmem:[%s2507_s3 + $0xd0] ss:$8 sps:$4 sm:$0xff]  }
  0x27   : > { %832 = vmatprep.subr.bf16.mxu1 %v1903_v17  ;;  %v1927_v37 = vld [vmem:[%s2507_s3 + $0xc4] ss:$8 sps:$4 sm:$0xff]   ;;  %v1929_v38 = vld [vmem:[%s2507_s3 + $0xc0] ss:$8 sps:$4 sm:$0xff]   ;;  %v1892_v39 = vld [vmem:[%s2138_s26 + $0x30] sm:$0xff]  }
  0x28   : > { %v1930_v40 = vld [vmem:[%s2507_s3 + $0xb4] ss:$8 sps:$4 sm:$0xff]   ;;  %v1932_v41 = vld [vmem:[%s2507_s3 + $0xb0] ss:$8 sps:$4 sm:$0xff]   ;;  %v1933_v43 = vld [vmem:[%s2507_s3 + $0xa4] ss:$8 sps:$4 sm:$0xff]  }
  0x29   : > { %v1893_v42 = vld [vmem:[%s2138_s26 + $0x38] sm:$0xff]   ;;  %v1935_v44 = vld [vmem:[%s2507_s3 + $0xa0] ss:$8 sps:$4 sm:$0xff]   ;;  %v1939_v47 = vld [vmem:[%s2507_s3 + $0x84] ss:$8 sps:$4 sm:$0xff]  }
  0x2a   : > { %833 = vmatpush1.bf16.msra.mxu1 %v1905_v18  ;;  %v1936_v45 = vld [vmem:[%s2507_s3 + $0x94] ss:$8 sps:$4 sm:$0xff]   ;;  %v1938_v46 = vld [vmem:[%s2507_s3 + $0x90] ss:$8 sps:$4 sm:$0xff]   ;;  %v1941_v48 = vld [vmem:[%s2507_s3 + $0x80] ss:$8 sps:$4 sm:$0xff]  }
  0x2b   : > { %834 = vmatprep.subr.bf16.mxu1 %v1906_v20  ;;  %v1942_v49 = vld [vmem:[#allocation2 + $0x70] ss:$8 sps:$4 sm:$0xff]   ;;  %v1944_v50 = vld [vmem:[#allocation2 + $0x74] ss:$8 sps:$4 sm:$0xff]   ;;  %v1947_v51 = vld [vmem:[#allocation2 + $0x64] ss:$8 sps:$4 sm:$0xff]  }
  0x2c   : > { %1191 = vmatprep.subr.bf16.mxu0 %v1944_v50  ;;  %v1945_v52 = vld [vmem:[#allocation2 + $0x60] ss:$8 sps:$4 sm:$0xff]   ;;  %v1950_v53 = vld [vmem:[#allocation2 + $0x54] ss:$8 sps:$4 sm:$0xff]   ;;  %v1948_v54 = vld [vmem:[#allocation2 + $0x50] ss:$8 sps:$4 sm:$0xff]  }
  0x2d   : > { %1691 = vmatmul.mubr.msk.bf16.gmra.mxu0 %vm426_vm2, %v1887_v14  ;;  %v1953_v55 = vld [vmem:[#allocation2 + $0x44] ss:$8 sps:$4 sm:$0xff]   ;;  %v1951_v56 = vld [vmem:[#allocation2 + $0x40] ss:$8 sps:$4 sm:$0xff]   ;;  %v1956_v57 = vld [vmem:[#allocation2 + $0x34] ss:$8 sps:$4 sm:$0xff]  }
  0x2e   : > { %513 = vmatprep.mubr.bf16.mxu0 %v2047_v0  ;;  %835 = vmatpush1.bf16.msra.mxu1 %v1908_v21  ;;  %v1954_v58 = vld [vmem:[#allocation2 + $0x30] ss:$8 sps:$4 sm:$0xff]   ;;  %v1959_v59 = vld [vmem:[#allocation2 + $0x24] ss:$8 sps:$4 sm:$0xff]   ;;  %v1957_v60 = vld [vmem:[#allocation2 + $0x20] ss:$8 sps:$4 sm:$0xff]  }
  0x2f   : > { %836 = vmatprep.subr.bf16.mxu1 %v1909_v22  ;;  %1192 = vmatpush1.bf16.msra.mxu0 %v1942_v49  ;;  %v1962_v61 = vld [vmem:[#allocation2 + $0x14] ss:$8 sps:$4 sm:$0xff]   ;;  %v1960_v62 = vld [vmem:[#allocation2 + $0x10] ss:$8 sps:$4 sm:$0xff]   ;;  %v1965_v63 = vld [vmem:[#allocation2 + $0x4] ss:$8 sps:$4 sm:$0xff]  }
  0x30   : > { %1193 = vmatprep.subr.bf16.mxu0 %v1947_v51  ;;  %v1968_v1 = vld [vmem:[#allocation2 + $0xf4] ss:$8 sps:$4 sm:$0xff]   ;;  %v1966_v2 = vld [vmem:[#allocation2 + $0xf0] ss:$8 sps:$4 sm:$0xff]   ;;  %v1971_v3 = vld [vmem:[#allocation2 + $0xe4] ss:$8 sps:$4 sm:$0xff]  }
  0x31   : > { %v1969_v4 = vld [vmem:[#allocation2 + $0xe0] ss:$8 sps:$4 sm:$0xff]   ;;  %v1974_v5 = vld [vmem:[#allocation2 + $0xd4] ss:$8 sps:$4 sm:$0xff]   ;;  %v1972_v6 = vld [vmem:[#allocation2 + $0xd0] ss:$8 sps:$4 sm:$0xff]  }
  0x32   : > { %837 = vmatpush1.bf16.msra.mxu1 %v1911_v23  ;;  %v1977_v7 = vld [vmem:[#allocation2 + $0xc4] ss:$8 sps:$4 sm:$0xff]   ;;  %v1975_v8 = vld [vmem:[#allocation2 + $0xc0] ss:$8 sps:$4 sm:$0xff]   ;;  %v1980_v9 = vld [vmem:[#allocation2 + $0xb4] ss:$8 sps:$4 sm:$0xff]  }
  0x33   : > { %838 = vmatprep.subr.bf16.mxu1 %v1912_v25  ;;  %1194 = vmatpush1.bf16.msra.mxu0 %v1945_v52  ;;  %v1978_v10 = vld [vmem:[#allocation2 + $0xb0] ss:$8 sps:$4 sm:$0xff]   ;;  %v2261_v14 = vsub.s32 0, %v372_v12  ;;  %v369_v15 = vld [vmem:[%s2506_s2] sm:$0x3] }
  0x34   : > { %1195 = vmatprep.subr.bf16.mxu0 %v1950_v53  ;;  %v2267_v17 = vrot.slane %v369_v15, %v2259_v13 }
  0x35   : > { %1692 = vmatmul.mubr.msk.bf16.gmra.mxu0 %vm426_vm2, %v1888_v19  ;;  %v2270_v18 = vrot.slane %v369_v15, %v2261_v14 }
  0x36   : > { %523 = vmatprep.mubr.bf16.mxu0 %v2047_v0  ;;  %839 = vmatpush1.bf16.msra.mxu1 %v1914_v26 }
  0x37   : > { %840 = vmatprep.subr.bf16.mxu1 %v1915_v27  ;;  %1196 = vmatpush1.bf16.msra.mxu0 %v1948_v54 }
  0x38   : > { %1197 = vmatprep.subr.bf16.mxu0 %v1953_v55 }
  0x3a   : > { %841 = vmatpush1.bf16.msra.mxu1 %v1917_v28 }
  0x3b   : > { %842 = vmatprep.subr.bf16.mxu1 %v1918_v30  ;;  %1198 = vmatpush1.bf16.msra.mxu0 %v1951_v56 }
  0x3c   : > { %1199 = vmatprep.subr.bf16.mxu0 %v1956_v57 }
  0x3d   : > { %1693 = vmatmul.mubr.msk.bf16.gmra.mxu0 %vm426_vm2, %v1889_v24 }
  0x3e   : > { %533 = vmatprep.mubr.bf16.mxu0 %v2047_v0  ;;  %843 = vmatpush2.bf16.msra.mxu1 %v1920_v31 }
  0x3f   : > { %844 = vmatprep.subr.bf16.mxu1 %v1921_v32  ;;  %1200 = vmatpush1.bf16.msra.mxu0 %v1954_v58 }
  0x40   : > { %1201 = vmatprep.subr.bf16.mxu0 %v1959_v59 }
  0x42   : > { %845 = vmatpush2.bf16.msra.mxu1 %v1923_v33 }
  0x43   : > { %846 = vmatprep.subr.bf16.mxu1 %v1924_v35  ;;  %1202 = vmatpush1.bf16.msra.mxu0 %v1957_v60 }
  0x44   : > { %1203 = vmatprep.subr.bf16.mxu0 %v1962_v61 }
  0x45   : > { %1694 = vmatmul.mubr.msk.bf16.gmra.mxu0 %vm426_vm2, %v1890_v29 }
  0x46   : > { %543 = vmatprep.mubr.bf16.mxu0 %v2047_v0  ;;  %847 = vmatpush2.bf16.msra.mxu1 %v1926_v36 }
  0x47   : > { %848 = vmatprep.subr.bf16.mxu1 %v1927_v37  ;;  %1204 = vmatpush1.bf16.msra.mxu0 %v1960_v62 }
  0x48   : > { %1205 = vmatprep.subr.bf16.mxu0 %v1965_v63 }
  0x4a   : > { %849 = vmatpush2.bf16.msra.mxu1 %v1929_v38 }
  0x4b   : > { %850 = vmatprep.subr.bf16.mxu1 %v1930_v40 }
  0x4d   : > { %1695 = vmatmul.mubr.msk.bf16.gmra.mxu0 %vm426_vm2, %v1891_v34 }
  0x4e   : > { %553 = vmatprep.mubr.bf16.mxu0 %v2047_v0  ;;  %851 = vmatpush2.bf16.msra.mxu1 %v1932_v41 }
  0x4f   : > { %852 = vmatprep.subr.bf16.mxu1 %v1933_v43 }
  0x52   : > { %853 = vmatpush2.bf16.msra.mxu1 %v1935_v44 }
  0x53   : > { %854 = vmatprep.subr.bf16.mxu1 %v1936_v45 }
  0x55   : > { %1696 = vmatmul.mubr.msk.bf16.gmra.mxu0 %vm426_vm2, %v1892_v39 }
  0x56   : > { %563 = vmatprep.mubr.bf16.mxu0 %v2047_v0  ;;  %855 = vmatpush2.bf16.msra.mxu1 %v1938_v46  ;;  %v1963_v0 = vld [vmem:[#allocation2] ss:$8 sps:$4 sm:$0xff]  }
  0x57   : > { %856 = vmatprep.subr.bf16.mxu1 %v1939_v47  ;;  %1206 = vmatpush1.bf16.msra.mxu0 %v1963_v0 }
  0x58   : > { %1207 = vmatprep.subr.bf16.mxu0 %v1968_v1 }
  0x5a   : > { %857 = vmatpush2.bf16.msra.mxu1 %v1941_v48 }
  0x5b   : > { %1208 = vmatpush2.bf16.msra.mxu0 %v1966_v2 }
  0x5c   : > { %1209 = vmatprep.subr.bf16.mxu0 %v1971_v3 }
  0x5d   : > { %1697 = vmatmul.mubr.msk.bf16.gmra.mxu0 %vm426_vm2, %v1893_v42 }
  0x5f   : > { %1210 = vmatpush2.bf16.msra.mxu0 %v1969_v4 }
  0x60   : > { %1211 = vmatprep.subr.bf16.mxu0 %v1974_v5 }
  0x63   : > { %1212 = vmatpush2.bf16.msra.mxu0 %v1972_v6 }
  0x64   : > { %1213 = vmatprep.subr.bf16.mxu0 %v1977_v7 }
  0x67   : > { %1214 = vmatpush2.bf16.msra.mxu0 %v1975_v8 }
  0x68   : > { %1215 = vmatprep.subr.bf16.mxu0 %v1980_v9 }
  0x6b   : > { %1216 = vmatpush2.bf16.msra.mxu0 %v1978_v10 }
  0xe5   : > { %v495_v16 = vpop.f32.mrf.mxu0 }
  0xe6   : > { %v496_v23 = vadd.f32 %v495_v16, %v2270_v18 }
  0xe7   : > { %v497_v19 = vpop.f32.mrf.mxu0 }
  0xe8   : > { %v498_v21 = vadd.f32 %v497_v19, %v2267_v17  ;;  %v574_v30 = vmax.f32 %v496_v23, 0.0 }
  0xe9   : > { %v499_v20 = vpop.f32.mrf.mxu0 }
  0xea   : > { %v500_v22 = vadd.f32 %v499_v20, %v2270_v18  ;;  %v575_v28 = vmax.f32 %v498_v21, 0.0 }
  0xeb   : > { %v501_v24 = vpop.f32.mrf.mxu0 }
  0xec   : > { %v502_v25 = vadd.f32 %v501_v24, %v2267_v17  ;;  %v576_v26 = vmax.f32 %v500_v22, 0.0 }
  0xed   : > { %v505_v27 = vpop.f32.mrf.mxu0 }
  0xee   : > { %v577_v29 = vmax.f32 %v502_v25, 0.0  ;;  %v606_v33 = vpack.c.bf16 %v576_v26, %v574_v30  ;;  %v506_v37 = vadd.f32 %v505_v27, %v2270_v18 }
  0xef   : > { %v507_v31 = vpop.f32.mrf.mxu0 }
  0xf0   : > { %v607_v32 = vpack.c.bf16 %v577_v29, %v575_v28  ;;  %v508_v35 = vadd.f32 %v507_v31, %v2267_v17  ;;  %v578_v44 = vmax.f32 %v506_v37, 0.0 }
  0xf1   : > { %v509_v34 = vpop.f32.mrf.mxu0 }
  0xf2   : > { %v510_v36 = vadd.f32 %v509_v34, %v2270_v18  ;;  %858 = vmatprep.mubr.bf16.mxu1 %v607_v32  ;;  %v579_v42 = vmax.f32 %v508_v35, 0.0 }
  0xf3   : > { %v511_v38 = vpop.f32.mrf.mxu0  ;;  %859 = vmatmul.mubr.bf16.vlgmr.msra.gmra.mxu1 %v606_v33 }
  0xf4   : > { %v512_v39 = vadd.f32 %v511_v38, %v2267_v17  ;;  %v580_v40 = vmax.f32 %v510_v36, 0.0 }
  0xf5   : > { %v515_v41 = vpop.f32.mrf.mxu0 }
  0xf6   : > { %v581_v43 = vmax.f32 %v512_v39, 0.0  ;;  %v608_v47 = vpack.c.bf16 %v580_v40, %v578_v44  ;;  %v516_v51 = vadd.f32 %v515_v41, %v2270_v18 }
  0xf7   : > { %v517_v45 = vpop.f32.mrf.mxu0 }
  0xf8   : > { %v609_v46 = vpack.c.bf16 %v581_v43, %v579_v42  ;;  %v518_v49 = vadd.f32 %v517_v45, %v2267_v17  ;;  %v582_v58 = vmax.f32 %v516_v51, 0.0 }
  0xf9   : > { %v519_v48 = vpop.f32.mrf.mxu0 }
  0xfa   : > { %v520_v50 = vadd.f32 %v519_v48, %v2270_v18  ;;  %868 = vmatprep.mubr.bf16.mxu1 %v609_v46  ;;  %v583_v56 = vmax.f32 %v518_v49, 0.0 }
  0xfb   : > { %v521_v52 = vpop.f32.mrf.mxu0  ;;  %869 = vmatmul.mubr.bf16.gmra.mxu1 %v608_v47 }
  0xfc   : > { %v522_v53 = vadd.f32 %v521_v52, %v2267_v17  ;;  %v584_v54 = vmax.f32 %v520_v50, 0.0 }
  0xfd   : > { %v525_v55 = vpop.f32.mrf.mxu0 }
  0xfe   : > { %v585_v57 = vmax.f32 %v522_v53, 0.0  ;;  %v610_v61 = vpack.c.bf16 %v584_v54, %v582_v58  ;;  %v526_v1 = vadd.f32 %v525_v55, %v2270_v18 }
  0xff   : > { %v527_v59 = vpop.f32.mrf.mxu0 }
 0x100   : > { %v611_v60 = vpack.c.bf16 %v585_v57, %v583_v56  ;;  %v528_v63 = vadd.f32 %v527_v59, %v2267_v17  ;;  %v586_v8 = vmax.f32 %v526_v1, 0.0 }
 0x101   : > { %v529_v62 = vpop.f32.mrf.mxu0 }
 0x102   : > { %v530_v0 = vadd.f32 %v529_v62, %v2270_v18  ;;  %878 = vmatprep.mubr.bf16.mxu1 %v611_v60  ;;  %v587_v6 = vmax.f32 %v528_v63, 0.0 }
 0x103   : > { %v531_v2 = vpop.f32.mrf.mxu0  ;;  %879 = vmatmul.mubr.bf16.gmra.mxu1 %v610_v61 }
 0x104   : > { %v532_v3 = vadd.f32 %v531_v2, %v2267_v17  ;;  %v588_v4 = vmax.f32 %v530_v0, 0.0 }
 0x105   : > { %v535_v5 = vpop.f32.mrf.mxu0 }
 0x106   : > { %v589_v7 = vmax.f32 %v532_v3, 0.0  ;;  %v612_v11 = vpack.c.bf16 %v588_v4, %v586_v8  ;;  %v536_v19 = vadd.f32 %v535_v5, %v2270_v18  ;;  %v1986_v8 = vld [vmem:[#allocation2 + $0x94] ss:$8 sps:$4 sm:$0xff]  }
 0x107   : > { %v537_v9 = vpop.f32.mrf.mxu0 }
 0x108   : > { %v613_v10 = vpack.c.bf16 %v589_v7, %v587_v6  ;;  %v538_v15 = vadd.f32 %v537_v9, %v2267_v17  ;;  %v590_v26 = vmax.f32 %v536_v19, 0.0  ;;  %v1983_v6 = vld [vmem:[#allocation2 + $0xa4] ss:$8 sps:$4 sm:$0xff]   ;;  %v1981_v7 = vld [vmem:[#allocation2 + $0xa0] ss:$8 sps:$4 sm:$0xff]  }
 0x109   : > { %v539_v12 = vpop.f32.mrf.mxu0  ;;  %1217 = vmatprep.subr.bf16.mxu0 %v1983_v6  ;;  %v1984_v9 = vld [vmem:[#allocation2 + $0x90] ss:$8 sps:$4 sm:$0xff]   ;;  %v1995_v19 = vld [vmem:[%s2511_s7 + $0x28] sm:$0xff]  }
 0x10a   : > { %v540_v16 = vadd.f32 %v539_v12, %v2270_v18  ;;  %888 = vmatprep.mubr.bf16.mxu1 %v613_v10  ;;  %v591_v24 = vmax.f32 %v538_v15, 0.0  ;;  %1218 = vmatpush2.bf16.msra.mxu0 %v1981_v7  ;;  %v1987_v10 = vld [vmem:[#allocation2 + $0x80] ss:$8 sps:$4 sm:$0xff]   ;;  %v1992_v12 = vld [vmem:[%s2511_s7 + $0x70] sm:$0xff]  }
 0x10b   : > { %v541_v20 = vpop.f32.mrf.mxu0  ;;  %889 = vmatmul.mubr.bf16.gmra.mxu1 %v612_v11  ;;  %1219 = vmatprep.subr.bf16.mxu0 %v1986_v8  ;;  %v1991_v11 = vld [vmem:[%s2511_s7 + $0x38] sm:$0xff]   ;;  %v1993_v15 = vld [vmem:[%s2511_s7 + $0x30] sm:$0xff]  }
 0x10c   : > { %v542_v21 = vadd.f32 %v541_v20, %v2267_v17  ;;  %v592_v22 = vmax.f32 %v540_v16, 0.0  ;;  %v1994_v16 = vld [vmem:[%s2511_s7 + $0x68] sm:$0xff]   ;;  %v1996_v20 = vld [vmem:[%s2511_s7 + $0x60] sm:$0xff]  }
 0x10d   : > { %v545_v23 = vpop.f32.mrf.mxu0 }
 0x10e   : > { %v593_v25 = vmax.f32 %v542_v21, 0.0  ;;  %v614_v29 = vpack.c.bf16 %v592_v22, %v590_v26  ;;  %v546_v33 = vadd.f32 %v545_v23, %v2270_v18  ;;  %1220 = vmatpush2.bf16.msra.mxu0 %v1984_v9  ;;  %v1997_v21 = vld [vmem:[%s2511_s7 + $0x20] sm:$0xff]   ;;  %v2331_v22 = vld [vmem:[%s2511_s7 + $0x58] sm:$0xff]  }
 0x10f   : > { %v547_v27 = vpop.f32.mrf.mxu0  ;;  %v2337_v23 = vld [vmem:[%s2511_s7 + $0x18] sm:$0xff]  }
 0x110   : > { %v615_v28 = vpack.c.bf16 %v593_v25, %v591_v24  ;;  %v548_v31 = vadd.f32 %v547_v27, %v2267_v17  ;;  %v594_v40 = vmax.f32 %v546_v33, 0.0  ;;  %v654_v24 = vld [vmem:[%s2508_s4] sm:$0x3] }
 0x111   : > { %v549_v30 = vpop.f32.mrf.mxu0  ;;  %v2344_v26 = vrot.slane %v654_v24, %v2259_v13  ;;  %v2347_v27 = vrot.slane %v654_v24, %v2261_v14 }
 0x112   : > { %v550_v32 = vadd.f32 %v549_v30, %v2270_v18  ;;  %898 = vmatprep.mubr.bf16.mxu1 %v615_v28  ;;  %v595_v38 = vmax.f32 %v548_v31, 0.0 }
 0x113   : > { %v551_v34 = vpop.f32.mrf.mxu0  ;;  %899 = vmatmul.mubr.bf16.gmra.mxu1 %v614_v29 }
 0x114   : > { %v552_v35 = vadd.f32 %v551_v34, %v2267_v17  ;;  %v596_v36 = vmax.f32 %v550_v32, 0.0 }
 0x115   : > { %v555_v37 = vpop.f32.mrf.mxu0 }
 0x116   : > { %v597_v39 = vmax.f32 %v552_v35, 0.0  ;;  %v616_v43 = vpack.c.bf16 %v596_v36, %v594_v40  ;;  %v556_v47 = vadd.f32 %v555_v37, %v2270_v18 }
 0x117   : > { %v557_v41 = vpop.f32.mrf.mxu0 }
 0x118   : > { %v617_v42 = vpack.c.bf16 %v597_v39, %v595_v38  ;;  %v558_v45 = vadd.f32 %v557_v41, %v2267_v17  ;;  %v598_v54 = vmax.f32 %v556_v47, 0.0 }
 0x119   : > { %v559_v44 = vpop.f32.mrf.mxu0 }
 0x11a   : > { %v560_v46 = vadd.f32 %v559_v44, %v2270_v18  ;;  %908 = vmatprep.mubr.bf16.mxu1 %v617_v42  ;;  %v599_v52 = vmax.f32 %v558_v45, 0.0 }
 0x11b   : > { %v561_v48 = vpop.f32.mrf.mxu0  ;;  %909 = vmatmul.mubr.bf16.gmra.mxu1 %v616_v43 }
 0x11c   : > { %v562_v49 = vadd.f32 %v561_v48, %v2267_v17  ;;  %v600_v50 = vmax.f32 %v560_v46, 0.0 }
 0x11d   : > { %v565_v51 = vpop.f32.mrf.mxu0 }
 0x11e   : > { %v601_v53 = vmax.f32 %v562_v49, 0.0  ;;  %v618_v57 = vpack.c.bf16 %v600_v50, %v598_v54  ;;  %v566_v61 = vadd.f32 %v565_v51, %v2270_v18 }
 0x11f   : > { %v567_v55 = vpop.f32.mrf.mxu0 }
 0x120   : > { %v619_v56 = vpack.c.bf16 %v601_v53, %v599_v52  ;;  %v568_v59 = vadd.f32 %v567_v55, %v2267_v17  ;;  %v602_v3 = vmax.f32 %v566_v61, 0.0 }
 0x121   : > { %v569_v58 = vpop.f32.mrf.mxu0 }
 0x122   : > { %v570_v60 = vadd.f32 %v569_v58, %v2270_v18  ;;  %918 = vmatprep.mubr.bf16.mxu1 %v619_v56  ;;  %v603_v1 = vmax.f32 %v568_v59, 0.0  ;;  %v1989_v18 = vld [vmem:[#allocation2 + $0x84] ss:$8 sps:$4 sm:$0xff]  }
 0x123   : > { %v571_v62 = vpop.f32.mrf.mxu0  ;;  %919 = vmatmul.mubr.bf16.gmra.mxu1 %v618_v57  ;;  %1221 = vmatprep.subr.bf16.mxu0 %v1989_v18 }
 0x124   : > { %v572_v63 = vadd.f32 %v571_v62, %v2267_v17  ;;  %v604_v0 = vmax.f32 %v570_v60, 0.0  ;;  %1222 = vmatpush2.bf16.msra.mxu0 %v1987_v10  ;;  %v1990_v17 = vld [vmem:[%s2511_s7 + $0x78] sm:$0xff]  }
 0x125   : > { %1845 = vmatprep.subr.bf16.mxu1 %v1990_v17  ;;  %1781 = vmatprep.subr.bf16.mxu0 %v1990_v17 }
 0x126   : > { %v605_v2 = vmax.f32 %v572_v63, 0.0  ;;  %v620_v5 = vpack.c.bf16 %v604_v0, %v602_v3  ;;  %1853 = vmatpush3.bf16.msra.mxu1 %v1991_v11 }
 0x127   : > { %1846 = vmatprep.subr.bf16.mxu1 %v1992_v12 }
 0x128   : > { %v621_v4 = vpack.c.bf16 %v605_v2, %v603_v1 }
 0x12a   : > { %928 = vmatprep.mubr.bf16.mxu1 %v621_v4  ;;  %1854 = vmatpush3.bf16.msra.mxu1 %v1993_v15 }
 0x12b   : > { %929 = vmatmul.mubr.bf16.gmra.mxu1 %v620_v5  ;;  %1847 = vmatprep.subr.bf16.mxu1 %v1994_v16 }
 0x12e   : > { %1855 = vmatpush3.bf16.msra.mxu1 %v1995_v19 }
 0x12f   : > { %1848 = vmatprep.subr.bf16.mxu1 %v1996_v20 }
 0x132   : > { %1856 = vmatpush3.bf16.msra.mxu1 %v1997_v21 }
 0x133   : > { %1849 = vmatprep.subr.bf16.mxu1 %v2331_v22 }
 0x136   : > { %1857 = vmatpush3.bf16.msra.mxu1 %v2337_v23 }
 0x1b3   : > { %v860_v25 = vpop.f32.mrf.mxu1 }
 0x1b4   : > { %v861_v32 = vadd.f32 %v860_v25, %v2347_v27 }
 0x1b5   : > { %v862_v28 = vpop.f32.mrf.mxu1 }
 0x1b6   : > { %v863_v30 = vadd.f32 %v862_v28, %v2344_v26  ;;  %v939_v39 = vmax.f32 %v861_v32, 0.0 }
 0x1b7   : > { %v864_v29 = vpop.f32.mrf.mxu1 }
 0x1b8   : > { %v865_v31 = vadd.f32 %v864_v29, %v2347_v27  ;;  %v940_v37 = vmax.f32 %v863_v30, 0.0 }
 0x1b9   : > { %v866_v33 = vpop.f32.mrf.mxu1 }
 0x1ba   : > { %v867_v34 = vadd.f32 %v866_v33, %v2344_v26  ;;  %v941_v35 = vmax.f32 %v865_v31, 0.0 }
 0x1bb   : > { %v870_v36 = vpop.f32.mrf.mxu1 }
 0x1bc   : > { %v942_v38 = vmax.f32 %v867_v34, 0.0  ;;  %v971_v42 = vpack.c.bf16 %v941_v35, %v939_v39  ;;  %v871_v46 = vadd.f32 %v870_v36, %v2347_v27 }
 0x1bd   : > { %v872_v40 = vpop.f32.mrf.mxu1 }
 0x1be   : > { %v972_v41 = vpack.c.bf16 %v942_v38, %v940_v37  ;;  %v873_v44 = vadd.f32 %v872_v40, %v2344_v26  ;;  %v943_v53 = vmax.f32 %v871_v46, 0.0 }
 0x1bf   : > { %v874_v43 = vpop.f32.mrf.mxu1 }
 0x1c0   : > { %v875_v45 = vadd.f32 %v874_v43, %v2347_v27  ;;  %1223 = vmatprep.mubr.bf16.mxu0 %v972_v41  ;;  %v944_v51 = vmax.f32 %v873_v44, 0.0 }
 0x1c1   : > { %v876_v47 = vpop.f32.mrf.mxu1  ;;  %1224 = vmatmul.mubr.bf16.vlgmr.msra.gmra.mxu0 %v971_v42 }
 0x1c2   : > { %v877_v48 = vadd.f32 %v876_v47, %v2344_v26  ;;  %1782 = vmatpush3.bf16.msra.mxu0 %v1991_v11  ;;  %v945_v49 = vmax.f32 %v875_v45, 0.0 }
 0x1c3   : > { %v880_v50 = vpop.f32.mrf.mxu1  ;;  %1783 = vmatprep.subr.bf16.mxu0 %v1992_v12 }
 0x1c4   : > { %v946_v52 = vmax.f32 %v877_v48, 0.0  ;;  %v973_v56 = vpack.c.bf16 %v945_v49, %v943_v53  ;;  %v881_v60 = vadd.f32 %v880_v50, %v2347_v27 }
 0x1c5   : > { %v882_v54 = vpop.f32.mrf.mxu1 }
 0x1c6   : > { %v974_v55 = vpack.c.bf16 %v946_v52, %v944_v51  ;;  %1784 = vmatpush3.bf16.msra.mxu0 %v1993_v15  ;;  %v883_v58 = vadd.f32 %v882_v54, %v2344_v26  ;;  %v947_v3 = vmax.f32 %v881_v60, 0.0 }
 0x1c7   : > { %v884_v57 = vpop.f32.mrf.mxu1  ;;  %1785 = vmatprep.subr.bf16.mxu0 %v1994_v16 }
 0x1c8   : > { %v885_v59 = vadd.f32 %v884_v57, %v2347_v27  ;;  %1233 = vmatprep.mubr.bf16.mxu0 %v974_v55  ;;  %v948_v1 = vmax.f32 %v883_v58, 0.0 }
 0x1c9   : > { %v886_v61 = vpop.f32.mrf.mxu1  ;;  %1234 = vmatmul.mubr.bf16.gmra.mxu0 %v973_v56 }
 0x1ca   : > { %v887_v62 = vadd.f32 %v886_v61, %v2344_v26  ;;  %1786 = vmatpush3.bf16.msra.mxu0 %v1995_v19  ;;  %v949_v63 = vmax.f32 %v885_v59, 0.0 }
 0x1cb   : > { %v890_v0 = vpop.f32.mrf.mxu1  ;;  %1787 = vmatprep.subr.bf16.mxu0 %v1996_v20 }
 0x1cc   : > { %v950_v2 = vmax.f32 %v887_v62, 0.0  ;;  %v975_v6 = vpack.c.bf16 %v949_v63, %v947_v3  ;;  %v891_v18 = vadd.f32 %v890_v0, %v2347_v27 }
 0x1cd   : > { %v892_v4 = vpop.f32.mrf.mxu1 }
 0x1ce   : > { %v976_v5 = vpack.c.bf16 %v950_v2, %v948_v1  ;;  %1788 = vmatpush3.bf16.msra.mxu0 %v1997_v21  ;;  %v893_v8 = vadd.f32 %v892_v4, %v2344_v26  ;;  %v951_v19 = vmax.f32 %v891_v18, 0.0 }
 0x1cf   : > { %v894_v7 = vpop.f32.mrf.mxu1  ;;  %1789 = vmatprep.subr.bf16.mxu0 %v2331_v22 }
 0x1d0   : > { %v895_v9 = vadd.f32 %v894_v7, %v2347_v27  ;;  %1243 = vmatprep.mubr.bf16.mxu0 %v976_v5  ;;  %v952_v15 = vmax.f32 %v893_v8, 0.0 }
 0x1d1   : > { %v896_v10 = vpop.f32.mrf.mxu1  ;;  %1244 = vmatmul.mubr.bf16.gmra.mxu0 %v975_v6 }
 0x1d2   : > { %v897_v17 = vadd.f32 %v896_v10, %v2344_v26  ;;  %1790 = vmatpush3.bf16.msra.mxu0 %v2337_v23  ;;  %v953_v11 = vmax.f32 %v895_v9, 0.0 }
 0x1d3   : > { %v900_v12 = vpop.f32.mrf.mxu1 }
 0x1d4   : > { %v954_v16 = vmax.f32 %v897_v17, 0.0  ;;  %v977_v22 = vpack.c.bf16 %v953_v11, %v951_v19  ;;  %v901_v29 = vadd.f32 %v900_v12, %v2347_v27  ;;  %v2004_v19 = vld [vmem:[%s2511_s7 + $0x40] sm:$0xff]  }
 0x1d5   : > { %v902_v20 = vpop.f32.mrf.mxu1 }
 0x1d6   : > { %v978_v21 = vpack.c.bf16 %v954_v16, %v952_v15  ;;  %v903_v25 = vadd.f32 %v902_v20, %v2344_v26  ;;  %v955_v35 = vmax.f32 %v901_v29, 0.0  ;;  %v2000_v15 = vld [vmem:[%s2511_s7 + $0x50] sm:$0xff]   ;;  %v2003_v16 = vld [vmem:[%s2511_s7 + $0x8] sm:$0xff]   ;;  %v2005_v20 = vld [vmem:[%s2511_s7] sm:$0xff]  }
 0x1d7   : > { %v904_v24 = vpop.f32.mrf.mxu1  ;;  %1791 = vmatprep.subr.bf16.mxu0 %v2000_v15  ;;  %1850 = vmatprep.subr.bf16.mxu1 %v2000_v15 }
 0x1d8   : > { %v905_v28 = vadd.f32 %v904_v24, %v2347_v27  ;;  %1253 = vmatprep.mubr.bf16.mxu0 %v978_v21  ;;  %v956_v33 = vmax.f32 %v903_v25, 0.0  ;;  %v1019_v21 = vld [vmem:[%s2510_s6] sm:$0x3] }
 0x1d9   : > { %v906_v30 = vpop.f32.mrf.mxu1  ;;  %1254 = vmatmul.mubr.bf16.gmra.mxu0 %v977_v22  ;;  %v2405_v24 = vrot.slane %v1019_v21, %v2259_v13  ;;  %v2408_v25 = vrot.slane %v1019_v21, %v2261_v14 }
 0x1da   : > { %v907_v23 = vadd.f32 %v906_v30, %v2344_v26  ;;  %v957_v31 = vmax.f32 %v905_v28, 0.0 }
 0x1db   : > { %v910_v32 = vpop.f32.mrf.mxu1 }
 0x1dc   : > { %v958_v34 = vmax.f32 %v907_v23, 0.0  ;;  %v979_v38 = vpack.c.bf16 %v957_v31, %v955_v35  ;;  %v911_v42 = vadd.f32 %v910_v32, %v2347_v27 }
 0x1dd   : > { %v912_v36 = vpop.f32.mrf.mxu1 }
 0x1de   : > { %v980_v37 = vpack.c.bf16 %v958_v34, %v956_v33  ;;  %v913_v40 = vadd.f32 %v912_v36, %v2344_v26  ;;  %v959_v49 = vmax.f32 %v911_v42, 0.0 }
 0x1df   : > { %v914_v39 = vpop.f32.mrf.mxu1 }
 0x1e0   : > { %v915_v41 = vadd.f32 %v914_v39, %v2347_v27  ;;  %1263 = vmatprep.mubr.bf16.mxu0 %v980_v37  ;;  %v960_v47 = vmax.f32 %v913_v40, 0.0 }
 0x1e1   : > { %v916_v43 = vpop.f32.mrf.mxu1  ;;  %1264 = vmatmul.mubr.bf16.gmra.mxu0 %v979_v38 }
 0x1e2   : > { %v917_v44 = vadd.f32 %v916_v43, %v2344_v26  ;;  %v961_v45 = vmax.f32 %v915_v41, 0.0 }
 0x1e3   : > { %v920_v46 = vpop.f32.mrf.mxu1 }
 0x1e4   : > { %v962_v48 = vmax.f32 %v917_v44, 0.0  ;;  %v981_v52 = vpack.c.bf16 %v961_v45, %v959_v49  ;;  %v921_v56 = vadd.f32 %v920_v46, %v2347_v27 }
 0x1e5   : > { %v922_v50 = vpop.f32.mrf.mxu1 }
 0x1e6   : > { %v982_v51 = vpack.c.bf16 %v962_v48, %v960_v47  ;;  %v923_v54 = vadd.f32 %v922_v50, %v2344_v26  ;;  %v963_v63 = vmax.f32 %v921_v56, 0.0 }
 0x1e7   : > { %v924_v53 = vpop.f32.mrf.mxu1 }
 0x1e8   : > { %v925_v55 = vadd.f32 %v924_v53, %v2347_v27  ;;  %1273 = vmatprep.mubr.bf16.mxu0 %v982_v51  ;;  %v964_v61 = vmax.f32 %v923_v54, 0.0 }
 0x1e9   : > { %v926_v57 = vpop.f32.mrf.mxu1  ;;  %1274 = vmatmul.mubr.bf16.gmra.mxu0 %v981_v52 }
 0x1ea   : > { %v927_v58 = vadd.f32 %v926_v57, %v2344_v26  ;;  %v965_v59 = vmax.f32 %v925_v55, 0.0 }
 0x1eb   : > { %v930_v60 = vpop.f32.mrf.mxu1 }
 0x1ec   : > { %v966_v62 = vmax.f32 %v927_v58, 0.0  ;;  %v983_v2 = vpack.c.bf16 %v965_v59, %v963_v63  ;;  %v931_v6 = vadd.f32 %v930_v60, %v2347_v27 }
 0x1ed   : > { %v932_v0 = vpop.f32.mrf.mxu1 }
 0x1ee   : > { %v984_v1 = vpack.c.bf16 %v966_v62, %v964_v61  ;;  %v933_v4 = vadd.f32 %v932_v0, %v2344_v26  ;;  %v967_v17 = vmax.f32 %v931_v6, 0.0 }
 0x1ef   : > { %v934_v3 = vpop.f32.mrf.mxu1 }
 0x1f0   : > { %v935_v5 = vadd.f32 %v934_v3, %v2347_v27  ;;  %1283 = vmatprep.mubr.bf16.mxu0 %v984_v1  ;;  %v968_v18 = vmax.f32 %v933_v4, 0.0  ;;  %v2001_v27 = vld [vmem:[%s2511_s7 + $0x10] sm:$0xff]  }
 0x1f1   : > { %v936_v7 = vpop.f32.mrf.mxu1  ;;  %1284 = vmatmul.mubr.bf16.gmra.mxu0 %v983_v2  ;;  %1858 = vmatpush3.bf16.msra.mxu1 %v2001_v27 }
 0x1f2   : > { %v937_v8 = vadd.f32 %v936_v7, %v2344_v26  ;;  %v969_v9 = vmax.f32 %v935_v5, 0.0  ;;  %1792 = vmatpush3.bf16.msra.mxu0 %v2001_v27  ;;  %v2002_v26 = vld [vmem:[%s2511_s7 + $0x48] sm:$0xff]  }
 0x1f3   : > { %1793 = vmatprep.subr.bf16.mxu0 %v2002_v26  ;;  %1851 = vmatprep.subr.bf16.mxu1 %v2002_v26 }
 0x1f4   : > { %v970_v10 = vmax.f32 %v937_v8, 0.0  ;;  %v985_v12 = vpack.c.bf16 %v969_v9, %v967_v17 }
 0x1f5   : > { %1859 = vmatpush3.bf16.msra.mxu1 %v2003_v16 }
 0x1f6   : > { %v986_v11 = vpack.c.bf16 %v970_v10, %v968_v18  ;;  %1794 = vmatpush3.bf16.msra.mxu0 %v2003_v16  ;;  %1852 = vmatprep.subr.bf16.mxu1 %v2004_v19 }
 0x1f7   : > { %1795 = vmatprep.subr.bf16.mxu0 %v2004_v19 }
 0x1f8   : > { %1293 = vmatprep.mubr.bf16.mxu0 %v986_v11 }
 0x1f9   : > { %1294 = vmatmul.mubr.bf16.gmra.mxu0 %v985_v12  ;;  %1860 = vmatpush3.bf16.msra.mxu1 %v2005_v20 }
 0x1fa   : > { %1796 = vmatpush3.bf16.msra.mxu0 %v2005_v20 }
 0x281   : > { %v1225_v22 = vpop.f32.mrf.mxu0 }
 0x282   : > { %v1226_v31 = vadd.f32 %v1225_v22, %v2408_v25 }
 0x283   : > { %v1227_v28 = vpop.f32.mrf.mxu0 }
 0x284   : > { %v1228_v30 = vadd.f32 %v1227_v28, %v2405_v24  ;;  %v1304_v13 = vmax.f32 %v1226_v31, 0.0 }
 0x285   : > { %v1229_v29 = vpop.f32.mrf.mxu0 }
 0x286   : > { %v1230_v23 = vadd.f32 %v1229_v29, %v2408_v25  ;;  %v1305_v36 = vmax.f32 %v1228_v30, 0.0 }
 0x287   : > { %v1231_v32 = vpop.f32.mrf.mxu0 }
 0x288   : > { %v1232_v33 = vadd.f32 %v1231_v32, %v2405_v24  ;;  %v1306_v34 = vmax.f32 %v1230_v23, 0.0 }
 0x289   : > { %v1235_v35 = vpop.f32.mrf.mxu0 }
 0x28a   : > { %v1307_v37 = vmax.f32 %v1232_v33, 0.0  ;;  %v1336_v14 = vpack.c.bf16 %v1306_v34, %v1304_v13  ;;  %v1236_v43 = vadd.f32 %v1235_v35, %v2408_v25 }
 0x28b   : > { %v1237_v38 = vpop.f32.mrf.mxu0 }
 0x28c   : > { %v1337_v39 = vpack.c.bf16 %v1307_v37, %v1305_v36  ;;  %v1238_v41 = vadd.f32 %v1237_v38, %v2405_v24  ;;  %v1308_v50 = vmax.f32 %v1236_v43, 0.0 }
 0x28d   : > { %v1239_v40 = vpop.f32.mrf.mxu0 }
 0x28e   : > { %v1240_v42 = vadd.f32 %v1239_v40, %v2408_v25  ;;  %1519 = vmatprep.mubr.bf16.mxu0 %v1337_v39  ;;  %v1309_v48 = vmax.f32 %v1238_v41, 0.0 }
 0x28f   : > { %v1241_v44 = vpop.f32.mrf.mxu0  ;;  %1520 = vmatmul.mubr.bf16.vlgmr.msra.gmra.mxu0 %v1336_v14 }
 0x290   : > { %v1242_v45 = vadd.f32 %v1241_v44, %v2405_v24  ;;  %v1310_v46 = vmax.f32 %v1240_v42, 0.0 }
 0x291   : > { %v1245_v47 = vpop.f32.mrf.mxu0 }
 0x292   : > { %v1311_v49 = vmax.f32 %v1242_v45, 0.0  ;;  %v1338_v53 = vpack.c.bf16 %v1310_v46, %v1308_v50  ;;  %v1246_v57 = vadd.f32 %v1245_v47, %v2408_v25 }
 0x293   : > { %v1247_v51 = vpop.f32.mrf.mxu0 }
 0x294   : > { %v1339_v52 = vpack.c.bf16 %v1311_v49, %v1309_v48  ;;  %v1248_v55 = vadd.f32 %v1247_v51, %v2405_v24  ;;  %v1312_v0 = vmax.f32 %v1246_v57, 0.0 }
 0x295   : > { %v1249_v54 = vpop.f32.mrf.mxu0 }
 0x296   : > { %v1250_v56 = vadd.f32 %v1249_v54, %v2408_v25  ;;  %1527 = vmatprep.mubr.bf16.mxu0 %v1339_v52  ;;  %v1313_v62 = vmax.f32 %v1248_v55, 0.0 }
 0x297   : > { %v1251_v58 = vpop.f32.mrf.mxu0  ;;  %1528 = vmatmul.mubr.bf16.gmra.mxu0 %v1338_v53 }
 0x298   : > { %v1252_v59 = vadd.f32 %v1251_v58, %v2405_v24  ;;  %v1314_v60 = vmax.f32 %v1250_v56, 0.0 }
 0x299   : > { %v1255_v61 = vpop.f32.mrf.mxu0 }
 0x29a   : > { %v1315_v63 = vmax.f32 %v1252_v59, 0.0  ;;  %v1340_v3 = vpack.c.bf16 %v1314_v60, %v1312_v0  ;;  %v1256_v7 = vadd.f32 %v1255_v61, %v2408_v25 }
 0x29b   : > { %v1257_v1 = vpop.f32.mrf.mxu0 }
 0x29c   : > { %v1341_v2 = vpack.c.bf16 %v1315_v63, %v1313_v62  ;;  %v1258_v5 = vadd.f32 %v1257_v1, %v2405_v24  ;;  %v1316_v12 = vmax.f32 %v1256_v7, 0.0 }
 0x29d   : > { %v1259_v4 = vpop.f32.mrf.mxu0 }
 0x29e   : > { %v1260_v6 = vadd.f32 %v1259_v4, %v2408_v25  ;;  %1535 = vmatprep.mubr.bf16.mxu0 %v1341_v2  ;;  %v1317_v17 = vmax.f32 %v1258_v5, 0.0 }
 0x29f   : > { %v1261_v8 = vpop.f32.mrf.mxu0  ;;  %1536 = vmatmul.mubr.bf16.gmra.mxu0 %v1340_v3 }
 0x2a0   : > { %v1262_v9 = vadd.f32 %v1261_v8, %v2405_v24  ;;  %v1318_v18 = vmax.f32 %v1260_v6, 0.0 }
 0x2a1   : > { %v1265_v10 = vpop.f32.mrf.mxu0 }
 0x2a2   : > { %v1319_v11 = vmax.f32 %v1262_v9, 0.0  ;;  %v1342_v26 = vpack.c.bf16 %v1318_v18, %v1316_v12  ;;  %v1266_v21 = vadd.f32 %v1265_v10, %v2408_v25  ;;  %v2446_v10 = vld [vmem:[%s2512_s8] ss:$0 sm:$0xff] }
 0x2a3   : > { %v1267_v15 = vpop.f32.mrf.mxu0 }
 0x2a4   : > { %v1343_v27 = vpack.c.bf16 %v1319_v11, %v1317_v17  ;;  %v1268_v19 = vadd.f32 %v1267_v15, %v2405_v24  ;;  %v1320_v32 = vmax.f32 %v1266_v21, 0.0 }
 0x2a5   : > { %v1269_v16 = vpop.f32.mrf.mxu0 }
 0x2a6   : > { %v1270_v20 = vadd.f32 %v1269_v16, %v2408_v25  ;;  %1543 = vmatprep.mubr.bf16.mxu1 %v1343_v27  ;;  %v1321_v23 = vmax.f32 %v1268_v19, 0.0 }
 0x2a7   : > { %v1271_v22 = vpop.f32.mrf.mxu0  ;;  %1544 = vmatmul.mubr.bf16.vlgmr.msra.gmra.mxu1 %v1342_v26 }
 0x2a8   : > { %v1272_v28 = vadd.f32 %v1271_v22, %v2405_v24  ;;  %v1322_v29 = vmax.f32 %v1270_v20, 0.0 }
 0x2a9   : > { %v1275_v30 = vpop.f32.mrf.mxu0 }
 0x2aa   : > { %v1323_v31 = vmax.f32 %v1272_v28, 0.0  ;;  %v1344_v35 = vpack.c.bf16 %v1322_v29, %v1320_v32  ;;  %v1276_v38 = vadd.f32 %v1275_v30, %v2408_v25 }
 0x2ab   : > { %v1277_v33 = vpop.f32.mrf.mxu0 }
 0x2ac   : > { %v1345_v34 = vpack.c.bf16 %v1323_v31, %v1321_v23  ;;  %v1278_v37 = vadd.f32 %v1277_v33, %v2405_v24  ;;  %v1324_v44 = vmax.f32 %v1276_v38, 0.0 }
 0x2ad   : > { %v1279_v36 = vpop.f32.mrf.mxu0 }
 0x2ae   : > { %v1280_v13 = vadd.f32 %v1279_v36, %v2408_v25  ;;  %1551 = vmatprep.mubr.bf16.mxu1 %v1345_v34  ;;  %v1325_v42 = vmax.f32 %v1278_v37, 0.0 }
 0x2af   : > { %v1281_v39 = vpop.f32.mrf.mxu0  ;;  %1552 = vmatmul.mubr.bf16.gmra.mxu1 %v1344_v35 }
 0x2b0   : > { %v1282_v14 = vadd.f32 %v1281_v39, %v2405_v24  ;;  %v1326_v40 = vmax.f32 %v1280_v13, 0.0 }
 0x2b1   : > { %v1285_v41 = vpop.f32.mrf.mxu0 }
 0x2b2   : > { %v1327_v43 = vmax.f32 %v1282_v14, 0.0  ;;  %v1346_v47 = vpack.c.bf16 %v1326_v40, %v1324_v44  ;;  %v1286_v51 = vadd.f32 %v1285_v41, %v2408_v25 }
 0x2b3   : > { %v1287_v45 = vpop.f32.mrf.mxu0 }
 0x2b4   : > { %v1347_v46 = vpack.c.bf16 %v1327_v43, %v1325_v42  ;;  %v1288_v49 = vadd.f32 %v1287_v45, %v2405_v24  ;;  %v1328_v58 = vmax.f32 %v1286_v51, 0.0 }
 0x2b5   : > { %v1289_v48 = vpop.f32.mrf.mxu0 }
 0x2b6   : > { %v1290_v50 = vadd.f32 %v1289_v48, %v2408_v25  ;;  %1559 = vmatprep.mubr.bf16.mxu1 %v1347_v46  ;;  %v1329_v56 = vmax.f32 %v1288_v49, 0.0 }
 0x2b7   : > { %v1291_v52 = vpop.f32.mrf.mxu0  ;;  %1560 = vmatmul.mubr.bf16.gmra.mxu1 %v1346_v47 }
 0x2b8   : > { %v1292_v53 = vadd.f32 %v1291_v52, %v2405_v24  ;;  %v1330_v54 = vmax.f32 %v1290_v50, 0.0 }
 0x2b9   : > { %v1295_v55 = vpop.f32.mrf.mxu0 }
 0x2ba   : > { %v1331_v57 = vmax.f32 %v1292_v53, 0.0  ;;  %v1348_v61 = vpack.c.bf16 %v1330_v54, %v1328_v58  ;;  %v1296_v1 = vadd.f32 %v1295_v55, %v2408_v25 }
 0x2bb   : > { %v1297_v59 = vpop.f32.mrf.mxu0 }
 0x2bc   : > { %v1349_v60 = vpack.c.bf16 %v1331_v57, %v1329_v56  ;;  %v1298_v63 = vadd.f32 %v1297_v59, %v2405_v24  ;;  %v1332_v7 = vmax.f32 %v1296_v1, 0.0 }
 0x2bd   : > { %v1299_v62 = vpop.f32.mrf.mxu0 }
 0x2be   : > { %v1300_v0 = vadd.f32 %v1299_v62, %v2408_v25  ;;  %1567 = vmatprep.mubr.bf16.mxu1 %v1349_v60  ;;  %v1333_v5 = vmax.f32 %v1298_v63, 0.0 }
 0x2bf   : > { %v1301_v2 = vpop.f32.mrf.mxu0  ;;  %1568 = vmatmul.mubr.bf16.gmra.mxu1 %v1348_v61 }
 0x2c0   : > { %v1302_v3 = vadd.f32 %v1301_v2, %v2405_v24  ;;  %v1334_v4 = vmax.f32 %v1300_v0, 0.0 }
 0x2c2   : > { %v1335_v6 = vmax.f32 %v1302_v3, 0.0  ;;  %v1350_v9 = vpack.c.bf16 %v1334_v4, %v1332_v7 }
 0x2c4   : > { %v1351_v8 = vpack.c.bf16 %v1335_v6, %v1333_v5 }
 0x2c6   : > { %1575 = vmatprep.mubr.bf16.mxu1 %v1351_v8 }
 0x2c7   : > { %1576 = vmatmul.mubr.bf16.gmra.mxu1 %v1350_v9 }
 0x34f   : > { %v1797_v18 = vpop.f32.mrf.mxu0 }
 0x351   : > { %v1798_v25 = vpop.f32.mrf.mxu0 }
 0x352   : > { %v1799_v17 = vadd.f32 %v1798_v25, %v1797_v18 }
 0x353   : > { %v1800_v24 = vpop.f32.mrf.mxu0 }
 0x354   : > { %v1522_v11 = vadd.f32 %v1799_v17, %v2446_v10 }
 0x355   : > { %v1801_v12 = vpop.f32.mrf.mxu0 }
 0x356   : > { %1585 = vst.msk [vmem:[%s2451_s22] sm:$0xff] %vm1584_vm3, %v1522_v11  ;;  %v1802_v15 = vadd.f32 %v1801_v12, %v1800_v24 }
 0x357   : > { %v1803_v27 = vpop.f32.mrf.mxu0 }
 0x358   : > { %v1525_v26 = vadd.f32 %v1802_v15, %v2446_v10 }
 0x359   : > { %v1804_v16 = vpop.f32.mrf.mxu0 }
 0x35a   : > { %1586 = vst.msk [vmem:[%s2451_s22 + $0x8] sm:$0xff] %vm1584_vm3, %v1525_v26  ;;  %v1805_v19 = vadd.f32 %v1804_v16, %v1803_v27 }
 0x35b   : > { %v1806_v20 = vpop.f32.mrf.mxu0 }
 0x35c   : > { %v1530_v21 = vadd.f32 %v1805_v19, %v2446_v10 }
 0x35d   : > { %v1807_v22 = vpop.f32.mrf.mxu0 }
 0x35e   : > { %1587 = vst.msk [vmem:[%s2451_s22 + $0x10] sm:$0xff] %vm1584_vm3, %v1530_v21  ;;  %v1808_v28 = vadd.f32 %v1807_v22, %v1806_v20 }
 0x35f   : > { %v1809_v29 = vpop.f32.mrf.mxu0 }
 0x360   : > { %v1533_v30 = vadd.f32 %v1808_v28, %v2446_v10 }
 0x361   : > { %v1810_v23 = vpop.f32.mrf.mxu0 }
 0x362   : > { %1588 = vst.msk [vmem:[%s2451_s22 + $0x18] sm:$0xff] %vm1584_vm3, %v1533_v30  ;;  %v1811_v31 = vadd.f32 %v1810_v23, %v1809_v29 }
 0x363   : > { %v1812_v32 = vpop.f32.mrf.mxu0 }
 0x364   : > { %v1538_v33 = vadd.f32 %v1811_v31, %v2446_v10 }
 0x365   : > { %v1813_v34 = vpop.f32.mrf.mxu0 }
 0x366   : > { %1589 = vst.msk [vmem:[%s2451_s22 + $0x20] sm:$0xff] %vm1584_vm3, %v1538_v33  ;;  %v1814_v35 = vadd.f32 %v1813_v34, %v1812_v32 }
 0x367   : > { %v1815_v36 = vpop.f32.mrf.mxu1 }
 0x368   : > { %v1541_v37 = vadd.f32 %v1814_v35, %v2446_v10 }
 0x369   : > { %v1816_v13 = vpop.f32.mrf.mxu1 }
 0x36a   : > { %1590 = vst.msk [vmem:[%s2451_s22 + $0x28] sm:$0xff] %vm1584_vm3, %v1541_v37  ;;  %v1817_v38 = vadd.f32 %v1816_v13, %v1815_v36 }
 0x36b   : > { %v1818_v39 = vpop.f32.mrf.mxu1 }
 0x36c   : > { %v1546_v14 = vadd.f32 %v1817_v38, %v2446_v10 }
 0x36d   : > { %v1819_v40 = vpop.f32.mrf.mxu1 }
 0x36e   : > { %1591 = vst.msk [vmem:[%s2451_s22 + $0x30] sm:$0xff] %vm1584_vm3, %v1546_v14  ;;  %v1820_v41 = vadd.f32 %v1819_v40, %v1818_v39 }
 0x36f   : > { %v1821_v42 = vpop.f32.mrf.mxu1 }
 0x370   : > { %v1549_v43 = vadd.f32 %v1820_v41, %v2446_v10 }
 0x371   : > { %v1822_v44 = vpop.f32.mrf.mxu1 }
 0x372   : > { %1592 = vst.msk [vmem:[%s2451_s22 + $0x38] sm:$0xff] %vm1584_vm3, %v1549_v43  ;;  %v1823_v45 = vadd.f32 %v1822_v44, %v1821_v42 }
 0x373   : > { %v1824_v46 = vpop.f32.mrf.mxu1 }
 0x374   : > { %v1554_v47 = vadd.f32 %v1823_v45, %v2446_v10 }
 0x375   : > { %v1825_v48 = vpop.f32.mrf.mxu1 }
 0x376   : > { %1593 = vst.msk [vmem:[%s2451_s22 + $0x40] sm:$0xff] %vm1584_vm3, %v1554_v47  ;;  %v1826_v49 = vadd.f32 %v1825_v48, %v1824_v46 }
 0x377   : > { %v1827_v50 = vpop.f32.mrf.mxu1 }
 0x378   : > { %v1557_v51 = vadd.f32 %v1826_v49, %v2446_v10 }
 0x379   : > { %v1828_v52 = vpop.f32.mrf.mxu1 }
 0x37a   : > { %1594 = vst.msk [vmem:[%s2451_s22 + $0x48] sm:$0xff] %vm1584_vm3, %v1557_v51  ;;  %v1829_v53 = vadd.f32 %v1828_v52, %v1827_v50 }
 0x37b   : > { %v1830_v54 = vpop.f32.mrf.mxu1 }
 0x37c   : > { %v1562_v55 = vadd.f32 %v1829_v53, %v2446_v10 }
 0x37d   : > { %v1831_v56 = vpop.f32.mrf.mxu1 }
 0x37e   : > { %1595 = vst.msk [vmem:[%s2451_s22 + $0x50] sm:$0xff] %vm1584_vm3, %v1562_v55  ;;  %v1832_v57 = vadd.f32 %v1831_v56, %v1830_v54 }
 0x37f   : > { %v1833_v58 = vpop.f32.mrf.mxu1 }
 0x380   : > { %v1565_v59 = vadd.f32 %v1832_v57, %v2446_v10 }
 0x381   : > { %v1834_v60 = vpop.f32.mrf.mxu1 }
 0x382   : > { %1596 = vst.msk [vmem:[%s2451_s22 + $0x58] sm:$0xff] %vm1584_vm3, %v1565_v59  ;;  %v1835_v61 = vadd.f32 %v1834_v60, %v1833_v58 }
 0x383   : > { %v1836_v62 = vpop.f32.mrf.mxu1 }
 0x384   : > { %v1570_v63 = vadd.f32 %v1835_v61, %v2446_v10 }
 0x385   : > { %v1837_v0 = vpop.f32.mrf.mxu1 }
 0x386   : > { %1597 = vst.msk [vmem:[%s2451_s22 + $0x60] sm:$0xff] %vm1584_vm3, %v1570_v63  ;;  %v1838_v1 = vadd.f32 %v1837_v0, %v1836_v62 }
 0x387   : > { %v1839_v2 = vpop.f32.mrf.mxu1 }
 0x388   : > { %v1573_v3 = vadd.f32 %v1838_v1, %v2446_v10 }
 0x389   : > { %v1840_v4 = vpop.f32.mrf.mxu1 }
 0x38a   : > { %1598 = vst.msk [vmem:[%s2451_s22 + $0x68] sm:$0xff] %vm1584_vm3, %v1573_v3  ;;  %v1841_v5 = vadd.f32 %v1840_v4, %v1839_v2 }
 0x38b   : > { %v1842_v6 = vpop.f32.mrf.mxu1 }
 0x38c   : > { %v1578_v7 = vadd.f32 %v1841_v5, %v2446_v10 }
 0x38d   : > { %v1843_v8 = vpop.f32.mrf.mxu1 }
 0x38e   : > { %1599 = vst.msk [vmem:[%s2451_s22 + $0x70] sm:$0xff] %vm1584_vm3, %v1578_v7  ;;  %v1844_v9 = vadd.f32 %v1843_v8, %v1842_v6 }
 0x390   : > { %v1581_v18 = vadd.f32 %v1844_v9, %v2446_v10 }
 0x392   : > { %1600 = vst.msk [vmem:[%s2451_s22 + $0x78] sm:$0xff] %vm1584_vm3, %v1581_v18 }
 0x393 PF: > { %s20_s30 = sadd.s32 1, %s2042_s30  }
 0x394   : > { %p17_p1 = scmp.ge.s32.totalorder %s20_s30, 5  }
 0x396   :  { %19 = sbr.rel (!%p17_p1) target bundleno = 1 (0x1), region = 91 }
 0x39b   :  { %1623 = vsyncpa [#allocation3], 1 }
 0x39c   :  { %1625 = vsyncpa [#allocation3 + $0x1], 1 }

</bundles_post_ra>
